<compile_context>
chip_gen: v7x
topology: tpu7x:2x2x1
jax: 0.10.0
libtpu: 0.0.40
codegen_flags: <defaults>
</compile_context>

<pallas_src>
import functools

import jax
import jax.numpy as jnp
import numpy as np
from jax.experimental import pallas as pl
from jax.experimental.pallas import tpu as pltpu


# --------------------------------------------------------------------------------------------
# Kernels
# --------------------------------------------------------------------------------------------
def _conv_tile(x_ref, xh_ref, w_ref, *, K, T):
    """im2col Conv1d for one time tile -> single MXU matmul.

    x_ref:  (N, T, C_in)       main block: padded input rows [t0, t0 + T)
    xh_ref: (N, 8, C_in)       halo block: first K-1 rows are padded input rows [t0+T, t0+T+K-1)
    w_ref:  (K*C_in, C_out)    w[k*C_in + c, o] = weight[o, c, k]
    returns (N, T, C_out) float32
    """
    xw = jnp.concatenate([x_ref[...], xh_ref[:, : K - 1, :]], axis=1)        # (N, T+K-1, C_in)
    cols = jnp.concatenate([xw[:, k:k + T, :] for k in range(K)], axis=-1)   # (N, T, K*C_in)
    return jax.lax.dot_general(
        cols, w_ref[...],
        dimension_numbers=(((2,), (0,)), ((), ())),
        preferred_element_type=jnp.float32)


def _conv_stats_kernel(x_ref, xh_ref, w_ref, stats_ref, *, K, T):
    """Pass 1: per-channel sum / sum-of-squares of the conv output (one-pass BN statistics)."""
    y = _conv_tile(x_ref, xh_ref, w_ref, K=K, T=T)          # (N, T, C_out) f32

    @pl.when(pl.program_id(0) == 0)
    def _init():
        stats_ref[...] = jnp.zeros_like(stats_ref)

    ys = y.reshape(-1, y.shape[-1])                          # (N*T, C_out), leading-dim merge only
    s1 = jnp.sum(ys, axis=0, keepdims=True)                  # (1, C_out)
    s2 = jnp.sum(ys * ys, axis=0, keepdims=True)             # (1, C_out)
    stats_ref[...] += jnp.concatenate([s1, s2], axis=0)      # resident accumulator across tiles


def _conv_norm_pool_kernel(x_ref, xh_ref, w_ref, st_ref, o_ref, *, K, T):
    """Pass 2: conv (recomputed, cheap) -> folded BN scale/shift -> MaxPool(4,4) -> ReLU."""
    y = _conv_tile(x_ref, xh_ref, w_ref, K=K, T=T)           # (N, T, C_out) f32

    scale = st_ref[0:1, :].reshape(1, 1, -1)                 # gamma * rsqrt(var + eps)
    shift = st_ref[1:2, :].reshape(1, 1, -1)                 # beta - mean * scale
    y = y * scale + shift

    # MaxPool1d(4, 4) via strided sublane slices (no tile-crossing reshape), then ReLU on the
    # 4x smaller pooled tensor (relu∘max == max∘relu).
    pooled = jnp.maximum(jnp.maximum(y[:, 0::4, :], y[:, 1::4, :]),
                         jnp.maximum(y[:, 2::4, :], y[:, 3::4, :]))
    o_ref[...] = jnp.maximum(pooled, 0.0).astype(o_ref.dtype)


# --------------------------------------------------------------------------------------------
# Wrapper
# --------------------------------------------------------------------------------------------
def _largest_tile(length, multiple, cap):
    """Largest t <= cap with t % multiple == 0 and length % t == 0 (None if none exists)."""
    best = None
    t = multiple
    cap = min(cap, length)
    while t <= cap:
        if length % t == 0:
            best = t
        t += multiple
    return best


def _halo_map(mult):
    # halo block (8 rows) starts at element (t+1)*T_tile == block index (t+1)*(T_tile//8)
    return lambda t: (0, (t + 1) * mult, 0)


def audio_cnn_block_forward(x, weight, bias, gamma, beta):
    """x: (N, C_in, L) f32 (PyTorch NCL). weight: (C_out, C_in, K). Returns (N, C_out, T_pool)."""
    N, C_in, L = x.shape
    C_out, _, K = weight.shape
    pad = 1
    L_out = L + 2 * pad - K + 1
    T_pool = L_out // 4
    assert T_pool >= 1
    assert 2 <= K <= 9, "halo block carries at most 8 rows (K-1 <= 8)"
    # TODO(synk): lengths where L_out is not a multiple of 8 would need tail masking in the
    # tiled kernels; common audio lengths (and the test below) satisfy this.
    assert L_out % 8 == 0

    # ---- glue: layout plumbing in plain JAX ----------------------------------------------
    x_pad = jnp.pad(x, ((0, 0), (0, 0), (pad, pad)))                  # (N, C_in, L_pad)
    x_tlc = jnp.transpose(x_pad, (0, 2, 1)).astype(jnp.float32)       # (N, L_pad, C_in)
    # im2col weight: w2[k*C_in + c, o] = weight[o, c, k]
    w2 = jnp.transpose(weight, (2, 1, 0)).reshape(K * C_in, C_out).astype(jnp.float32)
    L_pad = L + 2 * pad

    # Conv bias intentionally unused: training-mode BN mean subtraction cancels it exactly.
    del bias

    # ---- tile selection (sized for v7x's smaller VMEM; ~4 MiB per lane-padded input buffer)
    bytes_per_row = N * 128 * 4
    cap = max(32, (4 << 20) // bytes_per_row)
    t1 = _largest_tile(L_out, 8, cap) or L_out                         # stats pass tile
    t2 = (_largest_tile(L_out, 32, cap)                                # pooled tile mult of 8
          or _largest_tile(L_out, 32, L_out)
          or L_out)                                                    # fallback: full length
    g1, g2 = L_out // t1, L_out // t2
    tp2 = t2 // 4

    conv_flops = 2 * N * L_out * K * C_in * C_out
    cparams_stats = pltpu.CompilerParams(
        dimension_semantics=("arbitrary",),            # stats accumulate across time tiles
        vmem_limit_bytes=32 * 1024 * 1024)
    cparams_main = pltpu.CompilerParams(
        dimension_semantics=("parallel",),             # independent tiles -> both v7x TCs
        vmem_limit_bytes=32 * 1024 * 1024)

    # ---- pass 1: per-channel sum / sumsq of the conv output -------------------------------
    stats = pl.pallas_call(
        functools.partial(_conv_stats_kernel, K=K, T=t1),
        out_shape=jax.ShapeDtypeStruct((2, C_out), jnp.float32),
        grid=(g1,),
        in_specs=[
            pl.BlockSpec((N, t1, C_in), lambda t: (0, t, 0)),          # main time tile
            pl.BlockSpec((N, 8, C_in), _halo_map(t1 // 8)),            # K-1 halo rows
            pl.BlockSpec((K * C_in, C_out), lambda t: (0, 0)),
        ],
        out_specs=pl.BlockSpec((2, C_out), lambda t: (0, 0)),          # resident accumulator
        compiler_params=cparams_stats,
        cost_estimate=pl.CostEstimate(
            flops=conv_flops, transcendentals=0,
            bytes_accessed=x_tlc.size * 4 + w2.size * 4 + 2 * C_out * 4),
    )(x_tlc, x_tlc, w2)

    # ---- fold BN into per-channel scale/shift (tiny op, plain JAX) -------------------------
    cnt = jnp.float32(N * L_out)
    mean = stats[0] / cnt
    var = jnp.maximum(stats[1] / cnt - mean * mean, 0.0)               # biased variance
    scale = gamma.astype(jnp.float32) * jax.lax.rsqrt(var + 1e-5)
    shift = beta.astype(jnp.float32) - mean * scale
    st = jnp.stack([scale, shift], axis=0)                             # (2, C_out)

    # ---- pass 2: conv + scale/shift + maxpool + relu ---------------------------------------
    out_tlc = pl.pallas_call(
        functools.partial(_conv_norm_pool_kernel, K=K, T=t2),
        out_shape=jax.ShapeDtypeStruct((N, T_pool, C_out), jnp.float32),
        grid=(g2,),
        in_specs=[
            pl.BlockSpec((N, t2, C_in), lambda t: (0, t, 0)),
            pl.BlockSpec((N, 8, C_in), _halo_map(t2 // 8)),
            pl.BlockSpec((K * C_in, C_out), lambda t: (0, 0)),
            pl.BlockSpec((2, C_out), lambda t: (0, 0)),
        ],
        out_specs=pl.BlockSpec((N, tp2, C_out), lambda t: (0, t, 0)),
        compiler_params=cparams_main,
        cost_estimate=pl.CostEstimate(
            flops=conv_flops, transcendentals=0,
            bytes_accessed=x_tlc.size * 4 + w2.size * 4 + st.size * 4 + N * T_pool * C_out * 4),
    )(x_tlc, x_tlc, w2, st)

    # Back to PyTorch NCL (wrapper-side layout plumbing).
    return jnp.transpose(out_tlc, (0, 2, 1))


# --------------------------------------------------------------------------------------------
# Pure-JAX reference (PyTorch semantics, training-mode BN) and self-test
# --------------------------------------------------------------------------------------------
def _reference_forward(x, weight, bias, gamma, beta):
    N, C_in, L = x.shape
    C_out, _, K = weight.shape
    xp = jnp.pad(x, ((0, 0), (0, 0), (1, 1)))
    L_out = L + 2 - K + 1
    y = jnp.zeros((N, C_out, L_out), jnp.float32)
    for k in range(K):
        y = y + jnp.einsum('ncl,oc->nol', xp[:, :, k:k + L_out], weight[:, :, k])
    y = y + bias[None, :, None]
    mean = y.mean(axis=(0, 2), keepdims=True)
    var = ((y - mean) ** 2).mean(axis=(0, 2), keepdims=True)
    y = (y - mean) / jnp.sqrt(var + 1e-5) * gamma[None, :, None] + beta[None, :, None]
    y = jnp.maximum(y, 0.0)
    T_pool = L_out // 4
    return y[:, :, :T_pool * 4].reshape(N, C_out, T_pool, 4).max(axis=-1)


if __name__ == "__main__":
    # Small shapes consistent with the module: batch=2, n_input=4, n_out=8, kernel_size=3, L=16.
    N, C_in, C_out, K, L = 2, 4, 8, 3, 16

    key = jax.random.PRNGKey(0)
    kx, kw, kb = jax.random.split(key, 3)
    x = jax.random.normal(kx, (N, C_in, L), dtype=jnp.float32)
    weight = 0.1 * jax.random.normal(kw, (C_out, C_in, K), dtype=jnp.float32)   # Conv1d weight
    bias = 0.1 * jax.random.normal(kb, (C_out,), dtype=jnp.float32)             # Conv1d bias
    gamma = jnp.ones((C_out,), jnp.float32)                                     # BN default init
    beta = jnp.zeros((C_out,), jnp.float32)

    out = audio_cnn_block_forward(x, weight, bias, gamma, beta)
    jax.block_until_ready(out)

    ref = _reference_forward(x, weight, bias, gamma, beta)
    assert out.shape == (N, C_out, (L + 2 - K + 1) // 4)
    assert np.allclose(np.asarray(out), np.asarray(ref), rtol=1e-4, atol=1e-4)

    print("KERNEL_OK")
</pallas_src>

<mosaic_0001>
module attributes {stable_mosaic.version = 11 : i64} {
  func.func @_conv_stats_kernel(%arg0: i32, %arg1: memref<2x16x4xf32, #tpu.memory_space<vmem>>, %arg2: memref<2x8x4xf32, #tpu.memory_space<vmem>>, %arg3: memref<12x8xf32, #tpu.memory_space<vmem>>, %arg4: memref<2x8xf32, #tpu.memory_space<vmem>>) attributes {dimension_semantics = [#tpu.dimension_semantics<arbitrary>], iteration_bounds = array<i64: 1>, scalar_prefetch = 0 : i64, scratch_operands = 0 : i64, tpu.core_type = #tpu.core_type<tc>, window_params = [{transform_indices = @transform_0, window_bounds = array<i64: 2, 16, 4>}, {transform_indices = @transform_1, window_bounds = array<i64: 2, 8, 4>}, {pipeline_mode = #tpu.pipeline_mode<synchronous>, transform_indices = @transform_2, window_bounds = array<i64: 12, 8>}, {pipeline_mode = #tpu.pipeline_mode<synchronous>, transform_indices = @transform_3, window_bounds = array<i64: 2, 8>}]} {
    %c0 = arith.constant 0 : index
    %c0_0 = arith.constant 0 : index
    %c0_1 = arith.constant 0 : index
    %0 = vector.load %arg1[%c0, %c0_0, %c0_1] : memref<2x16x4xf32, #tpu.memory_space<vmem>>, vector<2x16x4xf32>
    %c0_2 = arith.constant 0 : index
    %c0_3 = arith.constant 0 : index
    %c0_4 = arith.constant 0 : index
    %1 = vector.load %arg2[%c0_2, %c0_3, %c0_4] : memref<2x8x4xf32, #tpu.memory_space<vmem>>, vector<2x2x4xf32>
    %2 = tpu.concatenate %0, %1 in 1 : vector<2x16x4xf32>, vector<2x2x4xf32> -> vector<2x18x4xf32>
    %3 = vector.extract_strided_slice %2 {offsets = [0, 0, 0], sizes = [2, 16, 4], strides = [1, 1, 1]} : vector<2x18x4xf32> to vector<2x16x4xf32>
    %4 = vector.extract_strided_slice %2 {offsets = [0, 1, 0], sizes = [2, 16, 4], strides = [1, 1, 1]} : vector<2x18x4xf32> to vector<2x16x4xf32>
    %5 = vector.extract_strided_slice %2 {offsets = [0, 2, 0], sizes = [2, 16, 4], strides = [1, 1, 1]} : vector<2x18x4xf32> to vector<2x16x4xf32>
    %6 = tpu.concatenate %3, %4, %5 in 2 : vector<2x16x4xf32>, vector<2x16x4xf32>, vector<2x16x4xf32> -> vector<2x16x12xf32>
    %c0_5 = arith.constant 0 : index
    %c0_6 = arith.constant 0 : index
    %7 = vector.load %arg3[%c0_5, %c0_6] : memref<12x8xf32, #tpu.memory_space<vmem>>, vector<12x8xf32>
    %cst = arith.constant dense<0.000000e+00> : vector<2x16x8xf32>
    %8 = tpu.matmul %6, %7, %cst {dimension_numbers = #tpu.dot_dimension_numbers<[2], [0], [0, 1], [1], [0, 0, 0, 1, 1, 1], [], []>} : vector<2x16x12xf32>, vector<12x8xf32>, vector<2x16x8xf32> -> vector<2x16x8xf32>
    %c0_i32 = arith.constant 0 : i32
    %9 = arith.cmpi eq, %arg0, %c0_i32 : i32
    %10 = arith.extui %9 : i1 to i32
    %c0_i32_7 = arith.constant 0 : i32
    %11 = arith.cmpi ne, %10, %c0_i32_7 : i32
    scf.if %11 {
      %cst_14 = arith.constant 0.000000e+00 : f32
      %22 = vector.broadcast %cst_14 : f32 to vector<2x8xf32>
      %c0_15 = arith.constant 0 : index
      %c0_16 = arith.constant 0 : index
      %23 = vector.load %arg4[%c0_15, %c0_16] : memref<2x8xf32, #tpu.memory_space<vmem>>, vector<2x8xf32>
      tpu.vector_store %arg4[%c0_15, %c0_16], %22 {strides = array<i32>} : memref<2x8xf32, #tpu.memory_space<vmem>>, vector<2x8xf32>,
    } else {
    }
    %12 = vector.shape_cast %8 : vector<2x16x8xf32> to vector<32x8xf32>
    %cst_8 = arith.constant dense<0.000000e+00> : vector<8xf32>
    %13 = vector.multi_reduction <add>, %12, %cst_8 [0] : vector<32x8xf32> to vector<8xf32>
    %14 = vector.shape_cast %13 : vector<8xf32> to vector<1x8xf32>
    %15 = arith.mulf %12, %12 : vector<32x8xf32>
    %cst_9 = arith.constant dense<0.000000e+00> : vector<8xf32>
    %16 = vector.multi_reduction <add>, %15, %cst_9 [0] : vector<32x8xf32> to vector<8xf32>
    %17 = vector.shape_cast %16 : vector<8xf32> to vector<1x8xf32>
    %c0_10 = arith.constant 0 : index
    %c0_11 = arith.constant 0 : index
    %18 = vector.load %arg4[%c0_10, %c0_11] : memref<2x8xf32, #tpu.memory_space<vmem>>, vector<2x8xf32>
    %19 = tpu.concatenate %14, %17 in 0 : vector<1x8xf32>, vector<1x8xf32> -> vector<2x8xf32>
    %20 = arith.addf %18, %19 : vector<2x8xf32>
    %c0_12 = arith.constant 0 : index
    %c0_13 = arith.constant 0 : index
    %21 = vector.load %arg4[%c0_12, %c0_13] : memref<2x8xf32, #tpu.memory_space<vmem>>, vector<2x8xf32>
    tpu.vector_store %arg4[%c0_12, %c0_13], %20 {strides = array<i32>} : memref<2x8xf32, #tpu.memory_space<vmem>>, vector<2x8xf32>,
    return
  }
  func.func @transform_0(%arg0: i32) -> (i32, i32, i32) {
    %c0_i32 = arith.constant 0 : i32
    %c0_i32_0 = arith.constant 0 : i32
    %c0_i32_1 = arith.constant 0 : i32
    return %c0_i32, %arg0, %c0_i32_0 : i32, i32, i32
  }
  func.func @transform_1(%arg0: i32) -> (i32, i32, i32) {
    %c1_i32 = arith.constant 1 : i32
    %0 = arith.addi %arg0, %c1_i32 : i32
    %c2_i32 = arith.constant 2 : i32
    %1 = arith.muli %0, %c2_i32 : i32
    %c0_i32 = arith.constant 0 : i32
    %c0_i32_0 = arith.constant 0 : i32
    %c0_i32_1 = arith.constant 0 : i32
    return %c0_i32, %1, %c0_i32_0 : i32, i32, i32
  }
  func.func @transform_2(%arg0: i32) -> (i32, i32) {
    %c0_i32 = arith.constant 0 : i32
    %c0_i32_0 = arith.constant 0 : i32
    %c0_i32_1 = arith.constant 0 : i32
    return %c0_i32, %c0_i32_0 : i32, i32
  }
  func.func @transform_3(%arg0: i32) -> (i32, i32) {
    %c0_i32 = arith.constant 0 : i32
    %c0_i32_0 = arith.constant 0 : i32
    %c0_i32_1 = arith.constant 0 : i32
    return %c0_i32, %c0_i32_0 : i32, i32
  }
}

</mosaic_0001>

<bundles_post_ra>
// kernel: tpu_custom_call.1
= control target key start
LH: loop header
LB: loop body
LE: loop exit
PB: predicated region body
PF: predicated region fallthrough
CT: control target
= control target key end

     0   :  { %vm140_vm0 = vcmask 1045504   ;;  %vm117_vm1 = vcmask 1046528   ;;  %s402_s27 = smov 8   ;;  %s403_s28 = smov 4   ;;  %vm188_vm2 = vcmask 1043456   ;;  %s507_s0 = inlined_call_operand.vmem [shape: f32[2,18,4], index: 0, kind: input, shape index: {}]   ;;  %s508_s1 = inlined_call_operand.vmem [shape: f32[2,18,4], index: 1, kind: input, shape index: {}]   ;;  %s509_s2 = inlined_call_operand.vmem [shape: f32[12,8], index: 2, kind: input, shape index: {}]   ;;  %s510_s3 = inlined_call_operand.hbm [shape: f32[2,8], index: 3, kind: output, shape index: {}]  }
   0x1   :  { %v44_v0 = vld [vmem:[%s507_s0] sm:$0xff]  ;;  %v433_v1 = vld [vmem:[%s507_s0 + $0x8] sm:$0xff]  ;;  %v440_v6 = vld [vmem:[%s507_s0 + $0x18] sm:$0xff] }
   0x2   :  { %v141_v2 = vrot.slane %v44_v0, 2  ;;  %v142_v3 = vrot.slane %v433_v1, 2  ;;  %v118_v4 = vrot.slane %v44_v0, 1  ;;  %v119_v5 = vrot.slane %v433_v1, 1  ;;  %v50_v7 = vld [vmem:[%s507_s0 + $0x20] sm:$0xff]  ;;  %v342_v10 = vld [vmem:[%s508_s1 + $0x10] sm:$0xff] }
   0x3   :  { %v123_v8 = vrot.slane %v440_v6, 1  ;;  %v124_v9 = vrot.slane %v50_v7, 1  ;;  %v343_v11 = vld [vmem:[%s508_s1 + $0x28] sm:$0xff]  ;;  %91 = vst [vmem:[#allocation3] sm:$0xff] %v342_v10  ;;  %v173_v14 = vld [vmem:[%s509_s2] sm:$0xff] }
   0x4   :  { %v143_v12 = vsel %vm140_vm0, %v141_v2, %v142_v3  ;;  %v120_v13 = vsel %vm117_vm1, %v118_v4, %v119_v5  ;;  %93 = vst [vmem:[#allocation3 + $0x8] sm:$0xff] %v343_v11  ;;  %v174_v15 = vld [vmem:[%s509_s2 + $0x8] sm:$0xf] }
   0x5   :  { %151 = vrot.lane.b32.xlu1 %v143_v12, %s402_s27  ;;  %128 = vrot.lane.b32.xlu0 %v120_v13, %s403_s28 }
   0x6   :  { %8 = vsyncpa [#allocation5], 0  ;;  %v125_v16 = vsel %vm117_vm1, %v123_v8, %v124_v9  ;;  %v365_v17 = vpack.c.bf16 %v174_v15, %v173_v14  ;;  %vm404_vm3 = vmmov 1   ;;  %v147_v20 = vrot.slane %v50_v7, 2  ;;  %s406_s1 = smov [#allocation4]  }
   0x7   :  { %vm366_vm4 = vmpackc.low %vm188_vm2, %vm404_vm3  ;;  %v146_v29 = vrot.slane %v440_v6, 2  ;;  %vm163_vm5 = vcmask 31744   ;;  %vm168_vm6 = vcmask 64512   ;;  %vm175_vm7 = vcmask 97280   ;;  %s325_s2 = sshll.u32 %s406_s1, 4  ;;  %s326_s2 = int_to_ptr.vmem [resolvable:$true] %s325_s2 }
   0x8   :  { %367 = vmatprep.subr.msk.bf16.mxu0 %vm366_vm4, %v365_v17  ;;  %371 = vmatprep.subr.msk.bf16.mxu1 %vm366_vm4, %v365_v17  ;;  %vm281_vm8 = vcmask 58368   ;;  %v405_v47 = vmov 0.0   ;;  %vm314_vm9 = vcmask 1040384   ;;  %s378_s29 = scalar_lea.vmem %s326_s2, 32  ;;  %p383_p1 = scmp.lt.s32.totalorder %s326_s2, %s326_s2 }
   0x9   :  { %132 = vrot.lane.b32.xlu1 %v125_v16, %s403_s28  ;;  %370 = vmatpush3.bf16.msk.msra.mxu0 %vm366_vm4, %v365_v17  ;;  %v148_v30 = vsel %vm140_vm0, %v146_v29, %v147_v20  ;;  %282 = vst.msk [vmem:[#allocation4] sm:$0x3] %vm281_vm8, %v405_v47  ;;  %p379_p0 = scmp.ne.s32.totalorder %s326_s2, %s378_s29  ;;  %p384_p2 = scmp.lt.s32.totalorder %s378_s29, %s378_s29 }
   0xa   :  { %372 = vmatpush3.bf16.msk.msra.mxu1 %vm366_vm4, %v365_v17  ;;  %v109_v18 = vld [vmem:[#allocation3] sm:$0x3] }
   0xb   :  { %v110_v19 = vld [vmem:[#allocation3 + $0x8] sm:$0x3]  ;;  %v121_v21 = vrot.slane %v109_v18, 1  ;;  %v144_v23 = vrot.slane %v109_v18, 2  ;;  %p385_p3 = por %p384_p2, %p383_p1 }
   0xc   :  { %v126_v22 = vrot.slane %v110_v19, 1  ;;  %v149_v24 = vrot.slane %v110_v19, 2 }
   0xd   :  { %v122_v25 = vsel %vm117_vm1, %v119_v5, %v121_v21  ;;  %v145_v27 = vsel %vm140_vm0, %v142_v3, %v144_v23  ;;  %p386_p4 = pnand %p385_p3, %p379_p0 }
   0xe   :  { %v127_v26 = vsel %vm117_vm1, %v124_v9, %v126_v22  ;;  %130 = vrot.lane.b32.xlu0 %v122_v25, %s403_s28  ;;  %v150_v28 = vsel %vm140_vm0, %v147_v20, %v149_v24 }
   0xf   :  { %134 = vrot.lane.b32.xlu1 %v127_v26, %s403_s28 }
  0x10   :  { %v313_v18 = vld [vmem:[#allocation4] sm:$0x3] }
  0x12   :  { %153 = vrot.lane.b32.xlu0 %v145_v27, %s402_s27 }
  0x13   :  { %157 = vrot.lane.b32.xlu1 %v150_v28, %s402_s27 }
  0x16   :  { %155 = vrot.lane.b32.xlu0 %v148_v30, %s402_s27 }
  0x77   :  { %v152_v31 = vpop.permute.xlu1 %151  ;;  %v129_v32 = vpop.permute.xlu0 %128 }
  0x78   :  { %v164_v33 = vsel %vm163_vm5, %v44_v0, %v129_v32 }
  0x79   :  { %v169_v34 = vsel %vm168_vm6, %v164_v33, %v152_v31 }
  0x7a   :  { %359 = vmatprep.mubr.msk.f32.mxu0 %vm175_vm7, %v169_v34 }
  0x7b   :  { %v133_v35 = vpop.permute.xlu1 %132 }
  0x7c   :  { %v166_v43 = vsel %vm163_vm5, %v440_v6, %v133_v35 }
  0x80   :  { %v131_v36 = vpop.permute.xlu0 %130 }
  0x81   :  { %v135_v37 = vpop.permute.xlu1 %134  ;;  %v165_v38 = vsel %vm163_vm5, %v433_v1, %v131_v36 }
  0x82   :  { %v167_v41 = vsel %vm163_vm5, %v50_v7, %v135_v37 }
  0x84   :  { %v154_v39 = vpop.permute.xlu0 %153 }
  0x85   :  { %v170_v40 = vsel %vm168_vm6, %v165_v38, %v154_v39  ;;  %v158_v42 = vpop.permute.xlu1 %157 }
  0x86   :  { %360 = vmatmul.mubr.msk.f32.vlgmr.msra.gmra.mrb[0].mxu0 %vm175_vm7, %v170_v40  ;;  %v172_v46 = vsel %vm168_vm6, %v167_v41, %v158_v42 }
  0x88   :  { %v156_v44 = vpop.permute.xlu0 %155 }
  0x89   :  { %v171_v45 = vsel %vm168_vm6, %v166_v43, %v156_v44 }
  0x8a   :  { %362 = vmatprep.mubr.msk.f32.mxu1 %vm175_vm7, %v171_v45 }
  0x8b   :  { %363 = vmatmul.mubr.msk.f32.vlgmr.msra.gmra.mrb[0].mxu1 %vm175_vm7, %v172_v46 }
 0x159   :  { %v361_v48 = vpop.f32.mrb[0].mxu0 }
 0x15a   :  { %v284_v49 = vsel %vm168_vm6, %v361_v48, 0.0  ;;  %v297_v50 = vmul.f32 %v361_v48, %v361_v48  ;;  %v258_v51 = vpop.f32.mrb[1].mxu0 }
 0x15b   :  { %v283_v52 = vsel %vm168_vm6, %v258_v51, 0.0  ;;  %v296_v53 = vmul.f32 %v258_v51, %v258_v51 }
 0x15c   :  { %v301_v54 = vsel %vm168_vm6, %v297_v50, 0.0  ;;  %v285_v55 = vadd.f32 %v284_v49, %v283_v52 }
 0x15d   :  { %v300_v56 = vsel %vm168_vm6, %v296_v53, 0.0 }
 0x15e   :  { %v302_v57 = vadd.f32 %v301_v54, %v300_v56  ;;  %v364_v58 = vpop.f32.mrb[0].mxu1 }
 0x15f   :  { %v268_v59 = vpop.f32.mrb[1].mxu1  ;;  %v299_v60 = vmul.f32 %v364_v58, %v364_v58  ;;  %v288_v0 = vsel %vm168_vm6, %v364_v58, 0.0 }
 0x160   :  { %v286_v61 = vsel %vm168_vm6, %v268_v59, 0.0  ;;  %v298_v62 = vmul.f32 %v268_v59, %v268_v59 }
 0x161   :  { %v287_v63 = vadd.f32 %v286_v61, %v285_v55  ;;  %v305_v4 = vsel %vm168_vm6, %v299_v60, 0.0 }
 0x162   :  { %v303_v1 = vsel %vm168_vm6, %v298_v62, 0.0 }
 0x163   :  { %v289_v2 = vadd.f32 %v288_v0, %v287_v63  ;;  %v304_v3 = vadd.f32 %v303_v1, %v302_v57 }
 0x165   :  { %v290_v5 = vrot.slane %v289_v2, 4  ;;  %v306_v6 = vadd.f32 %v305_v4, %v304_v3 }
 0x167   :  { %v291_v7 = vadd.f32 %v290_v5, %v289_v2  ;;  %v307_v8 = vrot.slane %v306_v6, 4 }
 0x169   :  { %v292_v9 = vrot.slane %v291_v7, 2  ;;  %v308_v10 = vadd.f32 %v307_v8, %v306_v6 }
 0x16b   :  { %v293_v11 = vadd.f32 %v292_v9, %v291_v7  ;;  %v309_v12 = vrot.slane %v308_v10, 2 }
 0x16d   :  { %v294_v13 = vrot.slane %v293_v11, 1  ;;  %v310_v14 = vadd.f32 %v309_v12, %v308_v10 }
 0x16f   :  { %v311_v15 = vrot.slane %v310_v14, 1  ;;  %v295_v16 = vadd.f32 %v294_v13, %v293_v11 }
 0x171   :  { %v312_v17 = vadd.f32 %v311_v15, %v310_v14 }
 0x173   :  { %v315_v19 = vsel %vm314_vm9, %v295_v16, %v312_v17 }
 0x174   :  { %v316_v20 = vadd.f32 %v315_v19, %v313_v18 }
 0x176   :  { %318 = vst.msk [vmem:[#allocation4] sm:$0x3] %vm281_vm8, %v316_v20 }
 0x177   :  { %389 = shalt.err (!%p386_p4)
}
 0x178   :  { %s390_s5 = scalar_lea.hbm %s510_s3, 32 }
 0x179   :  { %p391_p5 = scmp.ne.s32.totalorder %s510_s3, %s390_s5  ;;  %p394_p6 = scmp.lt.u32.totalorder %s390_s5, %s510_s3 }
 0x17b   :  { %p396_p7 = pnand %p394_p6, %p391_p5 }
 0x17d   :  { %399 = shalt.err (!%p396_p7)
}
 0x17e   :  { %328 = dma.vmem_to_hbm [thread:$0]  %s326_s2, 32, %s510_s3, [#allocation5]  }
 0x17f   :  { %400 = dma.done.wait [#allocation5], 32  }
 0x180   :  { %401 = vsyncadd [#allocation5], 4294967264 }
 0x181   :  { %332 = vsyncpa [#allocation5], 1 }

</bundles_post_ra>
